<compile_context>
chip_gen: v7x
topology: tpu7x:2x2x1
jax: 0.10.0
libtpu: 0.0.40
codegen_flags: <defaults>
</compile_context>

<pallas_src>
import jax
import jax.numpy as jnp
from jax.experimental import pallas as pl
from jax.experimental.pallas import tpu as pltpu


OUT_LANES = 128  # lane-dense slab for the scalar head output


def _decoder_cell_kernel(y_ref,      # VMEM (B, F)
                         h_ref,      # VMEM (B, H)
                         w_ir_ref,   # VMEM (F, H)
                         w_iz_ref,   # VMEM (F, H)
                         w_in_ref,   # VMEM (F, H)
                         w_hr_ref,   # VMEM (H, H)
                         w_hz_ref,   # VMEM (H, H)
                         w_hn_ref,   # VMEM (H, H)
                         b_r_ref,    # VMEM (1, H)  == b_ir + b_hr
                         b_z_ref,    # VMEM (1, H)  == b_iz + b_hz
                         b_in_ref,   # VMEM (1, H)
                         b_hn_ref,   # VMEM (1, H)
                         w_out_ref,  # VMEM (1, H)  Linear weight as a row
                         b_out_ref,  # VMEM (1, 1)
                         mask_ref,   # VMEM (B, H)  pre-scaled dropout mask
                         out_ref,    # VMEM (B, OUT_LANES)
                         new_h_ref): # VMEM (B, H)
    y = y_ref[...]
    h = h_ref[...]

    # Per-gate projections (PyTorch GRUCell gate order r, z, n).  Per-gate
    # weights keep every matmul output lane-aligned: no in-vreg slicing.
    r = jax.nn.sigmoid(
        jnp.dot(y, w_ir_ref[...], preferred_element_type=jnp.float32)
        + jnp.dot(h, w_hr_ref[...], preferred_element_type=jnp.float32)
        + b_r_ref[...])
    z = jax.nn.sigmoid(
        jnp.dot(y, w_iz_ref[...], preferred_element_type=jnp.float32)
        + jnp.dot(h, w_hz_ref[...], preferred_element_type=jnp.float32)
        + b_z_ref[...])
    i_n = jnp.dot(y, w_in_ref[...], preferred_element_type=jnp.float32) + b_in_ref[...]
    h_n = jnp.dot(h, w_hn_ref[...], preferred_element_type=jnp.float32) + b_hn_ref[...]
    n = jnp.tanh(i_n + r * h_n)

    h_new = (1.0 - z) * n + z * h                      # GRU hidden update

    # Linear(hidden, 1) head as a lane reduction (N=1 matmul wastes the MXU).
    # Applied to the PRE-dropout hidden state, matching the PyTorch module.
    out_val = jnp.sum(h_new * w_out_ref[...], axis=-1, keepdims=True) + b_out_ref[...]
    out_ref[...] = jnp.broadcast_to(out_val, out_ref.shape)   # lane-dense store

    # Inverted dropout: mask is already {0, 1/(1-p)}, precomputed in wrapper.
    new_h_ref[...] = h_new * mask_ref[...]


def init_decoder_cell_params(key, input_feature_len, hidden_size):
    """PyTorch-layout params with uniform(-1/sqrt(H), 1/sqrt(H)) init."""
    k = 1.0 / jnp.sqrt(jnp.float32(hidden_size))
    keys = jax.random.split(key, 6)
    u = lambda kk, shape: jax.random.uniform(kk, shape, jnp.float32, -k, k)
    return {
        "w_ih": u(keys[0], (3 * hidden_size, input_feature_len)),
        "w_hh": u(keys[1], (3 * hidden_size, hidden_size)),
        "b_ih": u(keys[2], (3 * hidden_size,)),
        "b_hh": u(keys[3], (3 * hidden_size,)),
        "w_out": u(keys[4], (1, hidden_size)),
        "b_out": u(keys[5], (1,)),
    }


def pack_decoder_params(params, hidden_size):
    """One-time repack into the kernel-friendly layout (per-gate, (in, out))."""
    H = hidden_size
    w_ih, w_hh = params["w_ih"], params["w_hh"]
    b_ih, b_hh = params["b_ih"], params["b_hh"]
    return {
        "w_ir": w_ih[0:H].T,       "w_iz": w_ih[H:2 * H].T, "w_in": w_ih[2 * H:].T,
        "w_hr": w_hh[0:H].T,       "w_hz": w_hh[H:2 * H].T, "w_hn": w_hh[2 * H:].T,
        "b_r": (b_ih[0:H] + b_hh[0:H]).reshape(1, H),
        "b_z": (b_ih[H:2 * H] + b_hh[H:2 * H]).reshape(1, H),
        "b_in": b_ih[2 * H:].reshape(1, H),
        "b_hn": b_hh[2 * H:].reshape(1, H),
        "w_out": params["w_out"].reshape(1, H),
        "b_out": params["b_out"].reshape(1, 1),
    }


def _make_dropout_mask(key, shape, p):
    """Pre-scaled inverted-dropout mask with values in {0, 1/(1-p)}."""
    if p <= 0.0:
        return jnp.ones(shape, jnp.float32)
    keep_prob = 1.0 - p
    keep = jax.random.bernoulli(key, keep_prob, shape)
    return keep.astype(jnp.float32) * jnp.float32(1.0 / keep_prob)


def decoder_cell_forward(prev_hidden, y, packed, dropout_key, dropout_p=0.2):
    """Pallas equivalent of DecoderCell.forward(prev_hidden, y) (training mode)."""
    assert 0.0 <= dropout_p < 1.0, "dropout_p must be in [0, 1)"
    B, H = prev_hidden.shape

    # TODO(synk): pltpu.prng_* has no interpret/CPU lowering, so the dropout
    # mask is generated here with jax.random and applied inside the kernel.
    mask = _make_dropout_mask(dropout_key, (B, H), dropout_p)

    vmem = pl.BlockSpec(memory_space=pltpu.MemorySpace.VMEM)

    out_pad, new_h = pl.pallas_call(
        _decoder_cell_kernel,
        out_shape=(
            jax.ShapeDtypeStruct((B, OUT_LANES), jnp.float32),  # lane-dense head slab
            jax.ShapeDtypeStruct((B, H), jnp.float32),          # dropped-out hidden
        ),
        in_specs=[vmem] * 15,
        out_specs=(vmem, vmem),
    )(y, prev_hidden,
      packed["w_ir"], packed["w_iz"], packed["w_in"],
      packed["w_hr"], packed["w_hz"], packed["w_hn"],
      packed["b_r"], packed["b_z"], packed["b_in"], packed["b_hn"],
      packed["w_out"], packed["b_out"], mask)

    return out_pad[:, :1], new_h


def decoder_cell_reference(prev_hidden, y, params, mask):
    """Pure-JAX reference mirroring the PyTorch module (same dropout mask)."""
    H = prev_hidden.shape[1]
    gi = y @ params["w_ih"].T + params["b_ih"]
    gh = prev_hidden @ params["w_hh"].T + params["b_hh"]
    i_r, i_z, i_n = gi[:, :H], gi[:, H:2 * H], gi[:, 2 * H:]
    h_r, h_z, h_n = gh[:, :H], gh[:, H:2 * H], gh[:, 2 * H:]
    r = jax.nn.sigmoid(i_r + h_r)
    z = jax.nn.sigmoid(i_z + h_z)
    n = jnp.tanh(i_n + r * h_n)
    h_new = (1.0 - z) * n + z * prev_hidden
    out = h_new @ params["w_out"].T + params["b_out"]
    return out, h_new * mask


if __name__ == "__main__":
    B, F_IN, HID = 8, 16, 32
    DROPOUT_P = 0.2

    key = jax.random.PRNGKey(0)
    k_params, k_h, k_y, k_drop = jax.random.split(key, 4)

    params = init_decoder_cell_params(k_params, F_IN, HID)
    packed = pack_decoder_params(params, HID)          # one-time layout repack

    prev_hidden = jax.random.normal(k_h, (B, HID), jnp.float32)
    y = jax.random.normal(k_y, (B, F_IN), jnp.float32)

    output, rnn_hidden_dropped = decoder_cell_forward(
        prev_hidden, y, packed, k_drop, dropout_p=DROPOUT_P)
    jax.block_until_ready((output, rnn_hidden_dropped))

    assert output.shape == (B, 1)
    assert rnn_hidden_dropped.shape == (B, HID)

    # Correctness vs a pure-JAX reference using the identical dropout mask.
    ref_mask = _make_dropout_mask(k_drop, (B, HID), DROPOUT_P)
    ref_out, ref_h = decoder_cell_reference(prev_hidden, y, params, ref_mask)
    assert jnp.allclose(output, ref_out, rtol=1e-2, atol=1e-2)
    assert jnp.allclose(rnn_hidden_dropped, ref_h, rtol=1e-2, atol=1e-2)

    print("KERNEL_OK")
</pallas_src>

<mosaic_0001>
module attributes {stable_mosaic.version = 11 : i64} {
  func.func @_decoder_cell_kernel(%arg0: memref<8x16xf32, #tpu.memory_space<vmem>>, %arg1: memref<8x32xf32, #tpu.memory_space<vmem>>, %arg2: memref<16x32xf32, #tpu.memory_space<vmem>>, %arg3: memref<16x32xf32, #tpu.memory_space<vmem>>, %arg4: memref<16x32xf32, #tpu.memory_space<vmem>>, %arg5: memref<32x32xf32, #tpu.memory_space<vmem>>, %arg6: memref<32x32xf32, #tpu.memory_space<vmem>>, %arg7: memref<32x32xf32, #tpu.memory_space<vmem>>, %arg8: memref<1x32xf32, #tpu.memory_space<vmem>>, %arg9: memref<1x32xf32, #tpu.memory_space<vmem>>, %arg10: memref<1x32xf32, #tpu.memory_space<vmem>>, %arg11: memref<1x32xf32, #tpu.memory_space<vmem>>, %arg12: memref<1x32xf32, #tpu.memory_space<vmem>>, %arg13: memref<1x1xf32, #tpu.memory_space<vmem>>, %arg14: memref<8x32xf32, #tpu.memory_space<vmem>>, %arg15: memref<8x128xf32, #tpu.memory_space<vmem>>, %arg16: memref<8x32xf32, #tpu.memory_space<vmem>>) attributes {dimension_semantics = [], scalar_prefetch = 0 : i64, scratch_operands = 0 : i64, tpu.core_type = #tpu.core_type<tc>} {
    %c0 = arith.constant 0 : index
    %c0_0 = arith.constant 0 : index
    %0 = vector.load %arg0[%c0, %c0_0] : memref<8x16xf32, #tpu.memory_space<vmem>>, vector<8x16xf32>
    %c0_1 = arith.constant 0 : index
    %c0_2 = arith.constant 0 : index
    %1 = vector.load %arg1[%c0_1, %c0_2] : memref<8x32xf32, #tpu.memory_space<vmem>>, vector<8x32xf32>
    %c0_3 = arith.constant 0 : index
    %c0_4 = arith.constant 0 : index
    %2 = vector.load %arg2[%c0_3, %c0_4] : memref<16x32xf32, #tpu.memory_space<vmem>>, vector<16x32xf32>
    %cst = arith.constant dense<0.000000e+00> : vector<8x32xf32>
    %3 = tpu.matmul %0, %2, %cst {dimension_numbers = #tpu.dot_dimension_numbers<[1], [0], [0], [1], [0, 0, 1, 1], [], []>} : vector<8x16xf32>, vector<16x32xf32>, vector<8x32xf32> -> vector<8x32xf32>
    %c0_5 = arith.constant 0 : index
    %c0_6 = arith.constant 0 : index
    %4 = vector.load %arg5[%c0_5, %c0_6] : memref<32x32xf32, #tpu.memory_space<vmem>>, vector<32x32xf32>
    %cst_7 = arith.constant dense<0.000000e+00> : vector<8x32xf32>
    %5 = tpu.matmul %1, %4, %cst_7 {dimension_numbers = #tpu.dot_dimension_numbers<[1], [0], [0], [1], [0, 0, 1, 1], [], []>} : vector<8x32xf32>, vector<32x32xf32>, vector<8x32xf32> -> vector<8x32xf32>
    %6 = arith.addf %3, %5 : vector<8x32xf32>
    %c0_8 = arith.constant 0 : index
    %c0_9 = arith.constant 0 : index
    %7 = vector.load %arg8[%c0_8, %c0_9] : memref<1x32xf32, #tpu.memory_space<vmem>>, vector<1x32xf32>
    %8 = vector.broadcast %7 : vector<1x32xf32> to vector<8x32xf32>
    %9 = arith.addf %6, %8 : vector<8x32xf32>
    %10 = arith.negf %9 : vector<8x32xf32>
    %11 = math.exp %10 : vector<8x32xf32>
    %cst_10 = arith.constant 1.000000e+00 : f32
    %12 = vector.broadcast %cst_10 : f32 to vector<8x32xf32>
    %13 = arith.addf %12, %11 : vector<8x32xf32>
    %14 = arith.divf %12, %13 : vector<8x32xf32>
    %c0_11 = arith.constant 0 : index
    %c0_12 = arith.constant 0 : index
    %15 = vector.load %arg3[%c0_11, %c0_12] : memref<16x32xf32, #tpu.memory_space<vmem>>, vector<16x32xf32>
    %cst_13 = arith.constant dense<0.000000e+00> : vector<8x32xf32>
    %16 = tpu.matmul %0, %15, %cst_13 {dimension_numbers = #tpu.dot_dimension_numbers<[1], [0], [0], [1], [0, 0, 1, 1], [], []>} : vector<8x16xf32>, vector<16x32xf32>, vector<8x32xf32> -> vector<8x32xf32>
    %c0_14 = arith.constant 0 : index
    %c0_15 = arith.constant 0 : index
    %17 = vector.load %arg6[%c0_14, %c0_15] : memref<32x32xf32, #tpu.memory_space<vmem>>, vector<32x32xf32>
    %cst_16 = arith.constant dense<0.000000e+00> : vector<8x32xf32>
    %18 = tpu.matmul %1, %17, %cst_16 {dimension_numbers = #tpu.dot_dimension_numbers<[1], [0], [0], [1], [0, 0, 1, 1], [], []>} : vector<8x32xf32>, vector<32x32xf32>, vector<8x32xf32> -> vector<8x32xf32>
    %19 = arith.addf %16, %18 : vector<8x32xf32>
    %c0_17 = arith.constant 0 : index
    %c0_18 = arith.constant 0 : index
    %20 = vector.load %arg9[%c0_17, %c0_18] : memref<1x32xf32, #tpu.memory_space<vmem>>, vector<1x32xf32>
    %21 = vector.broadcast %20 : vector<1x32xf32> to vector<8x32xf32>
    %22 = arith.addf %19, %21 : vector<8x32xf32>
    %23 = arith.negf %22 : vector<8x32xf32>
    %24 = math.exp %23 : vector<8x32xf32>
    %cst_19 = arith.constant 1.000000e+00 : f32
    %25 = vector.broadcast %cst_19 : f32 to vector<8x32xf32>
    %26 = arith.addf %25, %24 : vector<8x32xf32>
    %27 = arith.divf %25, %26 : vector<8x32xf32>
    %c0_20 = arith.constant 0 : index
    %c0_21 = arith.constant 0 : index
    %28 = vector.load %arg4[%c0_20, %c0_21] : memref<16x32xf32, #tpu.memory_space<vmem>>, vector<16x32xf32>
    %cst_22 = arith.constant dense<0.000000e+00> : vector<8x32xf32>
    %29 = tpu.matmul %0, %28, %cst_22 {dimension_numbers = #tpu.dot_dimension_numbers<[1], [0], [0], [1], [0, 0, 1, 1], [], []>} : vector<8x16xf32>, vector<16x32xf32>, vector<8x32xf32> -> vector<8x32xf32>
    %c0_23 = arith.constant 0 : index
    %c0_24 = arith.constant 0 : index
    %30 = vector.load %arg10[%c0_23, %c0_24] : memref<1x32xf32, #tpu.memory_space<vmem>>, vector<1x32xf32>
    %31 = vector.broadcast %30 : vector<1x32xf32> to vector<8x32xf32>
    %32 = arith.addf %29, %31 : vector<8x32xf32>
    %c0_25 = arith.constant 0 : index
    %c0_26 = arith.constant 0 : index
    %33 = vector.load %arg7[%c0_25, %c0_26] : memref<32x32xf32, #tpu.memory_space<vmem>>, vector<32x32xf32>
    %cst_27 = arith.constant dense<0.000000e+00> : vector<8x32xf32>
    %34 = tpu.matmul %1, %33, %cst_27 {dimension_numbers = #tpu.dot_dimension_numbers<[1], [0], [0], [1], [0, 0, 1, 1], [], []>} : vector<8x32xf32>, vector<32x32xf32>, vector<8x32xf32> -> vector<8x32xf32>
    %c0_28 = arith.constant 0 : index
    %c0_29 = arith.constant 0 : index
    %35 = vector.load %arg11[%c0_28, %c0_29] : memref<1x32xf32, #tpu.memory_space<vmem>>, vector<1x32xf32>
    %36 = vector.broadcast %35 : vector<1x32xf32> to vector<8x32xf32>
    %37 = arith.addf %34, %36 : vector<8x32xf32>
    %38 = arith.mulf %14, %37 : vector<8x32xf32>
    %39 = arith.addf %32, %38 : vector<8x32xf32>
    %40 = math.tanh %39 : vector<8x32xf32>
    %cst_30 = arith.constant 1.000000e+00 : f32
    %41 = vector.broadcast %cst_30 : f32 to vector<8x32xf32>
    %42 = arith.subf %41, %27 : vector<8x32xf32>
    %43 = arith.mulf %42, %40 : vector<8x32xf32>
    %44 = arith.mulf %27, %1 : vector<8x32xf32>
    %45 = arith.addf %43, %44 : vector<8x32xf32>
    %c0_31 = arith.constant 0 : index
    %c0_32 = arith.constant 0 : index
    %46 = vector.load %arg12[%c0_31, %c0_32] : memref<1x32xf32, #tpu.memory_space<vmem>>, vector<1x32xf32>
    %47 = vector.broadcast %46 : vector<1x32xf32> to vector<8x32xf32>
    %48 = arith.mulf %45, %47 : vector<8x32xf32>
    %cst_33 = arith.constant dense<0.000000e+00> : vector<8xf32>
    %49 = vector.multi_reduction <add>, %48, %cst_33 [1] : vector<8x32xf32> to vector<8xf32>
    %50 = vector.shape_cast %49 : vector<8xf32> to vector<8x1xf32>
    %c0_34 = arith.constant 0 : index
    %c0_35 = arith.constant 0 : index
    %51 = vector.load %arg13[%c0_34, %c0_35] : memref<1x1xf32, #tpu.memory_space<vmem>>, vector<1x1xf32>
    %52 = vector.broadcast %51 : vector<1x1xf32> to vector<8x1xf32>
    %53 = arith.addf %50, %52 : vector<8x1xf32>
    %54 = vector.shape_cast %53 : vector<8x1xf32> to vector<8x1xf32>
    %55 = vector.broadcast %54 : vector<8x1xf32> to vector<8x128xf32>
    %c0_36 = arith.constant 0 : index
    %c0_37 = arith.constant 0 : index
    %56 = vector.load %arg15[%c0_36, %c0_37] : memref<8x128xf32, #tpu.memory_space<vmem>>, vector<8x128xf32>
    tpu.vector_store %arg15[%c0_36, %c0_37], %55 {strides = array<i32>} : memref<8x128xf32, #tpu.memory_space<vmem>>, vector<8x128xf32>,
    %c0_38 = arith.constant 0 : index
    %c0_39 = arith.constant 0 : index
    %57 = vector.load %arg14[%c0_38, %c0_39] : memref<8x32xf32, #tpu.memory_space<vmem>>, vector<8x32xf32>
    %58 = arith.mulf %45, %57 : vector<8x32xf32>
    %c0_40 = arith.constant 0 : index
    %c0_41 = arith.constant 0 : index
    %59 = vector.load %arg16[%c0_40, %c0_41] : memref<8x32xf32, #tpu.memory_space<vmem>>, vector<8x32xf32>
    tpu.vector_store %arg16[%c0_40, %c0_41], %58 {strides = array<i32>} : memref<8x32xf32, #tpu.memory_space<vmem>>, vector<8x32xf32>,
    return
  }
}

</mosaic_0001>

<bundles_post_ra>
// kernel: tpu_custom_call.1
= control target key start
LH: loop header
LB: loop body
LE: loop exit
PB: predicated region body
PF: predicated region fallthrough
CT: control target
= control target key end

     0   :  { %s1329_s0 = inlined_call_operand.hbm [shape: f32[8,16], index: 0, kind: input, shape index: {}]   ;;  %s1330_s1 = inlined_call_operand.hbm [shape: f32[8,32], index: 1, kind: input, shape index: {}]   ;;  %s1331_s2 = inlined_call_operand.hbm [shape: f32[16,32], index: 2, kind: input, shape index: {}]   ;;  %s1332_s3 = inlined_call_operand.hbm [shape: f32[16,32], index: 3, kind: input, shape index: {}]   ;;  %s1333_s4 = inlined_call_operand.vmem [shape: f32[16,32], index: 4, kind: input, shape index: {}]   ;;  %s1334_s5 = inlined_call_operand.hbm [shape: f32[32,32], index: 5, kind: input, shape index: {}]   ;;  %s1335_s6 = inlined_call_operand.hbm [shape: f32[32,32], index: 6, kind: input, shape index: {}]   ;;  %s1336_s7 = inlined_call_operand.hbm [shape: f32[32,32], index: 7, kind: input, shape index: {}]   ;;  %s1337_s8 = inlined_call_operand.vmem [shape: f32[1,32], index: 8, kind: input, shape index: {}]   ;;  %s1338_s9 = inlined_call_operand.vmem [shape: f32[1,32], index: 9, kind: input, shape index: {}]   ;;  %s1339_s10 = inlined_call_operand.vmem [shape: f32[1,32], index: 10, kind: input, shape index: {}]   ;;  %s1340_s11 = inlined_call_operand.vmem [shape: f32[1,32], index: 11, kind: input, shape index: {}]   ;;  %s1341_s12 = inlined_call_operand.vmem [shape: f32[1,32], index: 12, kind: input, shape index: {}]   ;;  %s1342_s13 = inlined_call_operand.<no memory space> [shape: f32[1,1], index: 13, kind: input, shape index: {}]   ;;  %s1343_s14 = inlined_call_operand.vmem [shape: f32[8,32], index: 14, kind: input, shape index: {}]   ;;  %s1344_s15 = inlined_call_operand.hbm [shape: f32[8,128], index: 15, kind: output, shape index: {0}]   ;;  %s1345_s16 = inlined_call_operand.hbm [shape: f32[8,32], index: 16, kind: output, shape index: {1}]  }
   0x1   :  { %1347 = sst [smem:[#allocation24_spill]] %s1329_s0  ;;  %v22_v0 = vstv %s1342_s13 }
   0x2   :  { %23 = vst [vmem:[#allocation2] sm:$0x1] %v22_v0 }
   0x3   :  { %24 = vsyncpa [#allocation4], 0 }
   0x4   :  { %25 = vsyncpa [#allocation7], 0 }
   0x5   :  { %26 = vsyncpa [#allocation10], 0 }
   0x6   :  { %27 = vsyncpa [#allocation13], 0 }
   0x7   :  { %28 = vsyncpa [#allocation5], 0 }
   0x8   :  { %29 = vsyncpa [#allocation17], 0  ;;  %s1059_s23 = smov [#allocation6]   ;;  %s849_s27 = scalar_lea.hbm %s1330_s1, 128 }
   0x9   :  { %s46_s24 = sshll.u32 %s1059_s23, 4  ;;  %p850_p0 = scmp.ne.s32.totalorder %s1330_s1, %s849_s27  ;;  %s47_s24 = int_to_ptr.vmem [resolvable:$true] %s46_s24 }
   0xa   :  { %p853_p1 = scmp.lt.u32.totalorder %s849_s27, %s1330_s1 }
   0xc   :  { %p855_p2 = pnand %p853_p1, %p850_p0 }
   0xe   :  { %858 = shalt.err (!%p855_p2)
}
   0xf   :  { %s859_s0 = scalar_lea.vmem %s47_s24, 128  ;;  %p864_p4 = scmp.lt.s32.totalorder %s47_s24, %s47_s24 }
  0x10   :  { %p860_p3 = scmp.ne.s32.totalorder %s47_s24, %s859_s0  ;;  %p865_p5 = scmp.lt.s32.totalorder %s859_s0, %s859_s0 }
  0x12   :  { %p866_p6 = por %p865_p5, %p864_p4 }
  0x14   :  { %p867_p7 = pnand %p866_p6, %p860_p3 }
  0x16   :  { %870 = shalt.err (!%p867_p7)
}
  0x17   :  { %49 = dma.hbm_to_vmem [thread:$0]  %s1330_s1, 128, %s47_s24, [#allocation7]  }
  0x18   :  { %s1060_s19 = smov [#allocation9]   ;;  %s1061_s21 = smov [#allocation12]  }
  0x19   :  { %s67_s20 = sshll.u32 %s1060_s19, 4  ;;  %s93_s22 = sshll.u32 %s1061_s21, 4  ;;  %s68_s20 = int_to_ptr.vmem [resolvable:$true] %s67_s20  ;;  %s94_s22 = int_to_ptr.vmem [resolvable:$true] %s93_s22 }
  0x1a   :  { %s871_s26 = scalar_lea.hbm %s1332_s3, 256 }
  0x1b   :  { %p872_p8 = scmp.ne.s32.totalorder %s1332_s3, %s871_s26  ;;  %p875_p9 = scmp.lt.u32.totalorder %s871_s26, %s1332_s3 }
  0x1d   :  { %p877_p10 = pnand %p875_p9, %p872_p8 }
  0x1f   :  { %880 = shalt.err (!%p877_p10)
}
  0x20   :  { %s881_s1 = scalar_lea.vmem %s68_s20, 256  ;;  %p886_p12 = scmp.lt.s32.totalorder %s68_s20, %s68_s20 }
  0x21   :  { %p882_p11 = scmp.ne.s32.totalorder %s68_s20, %s881_s1  ;;  %p887_p13 = scmp.lt.s32.totalorder %s881_s1, %s881_s1 }
  0x23   :  { %p888_p0 = por %p887_p13, %p886_p12 }
  0x25   :  { %p889_p1 = pnand %p888_p0, %p882_p11 }
  0x27   :  { %892 = shalt.err (!%p889_p1)
}
  0x28   :  { %s1062_s24 = smov 128   ;;  %s1063_s13 = smov 8  }
  0x29   :  { %73 = dma.hbm_to_vmem [thread:$0]  %s1332_s3, 256, %s68_s20, [#allocation10], %s1062_s24, %s1062_s24, %s1063_s13  }
  0x2a   :  { %s893_s21 = scalar_lea.hbm %s1335_s6, 512 }
  0x2b   :  { %p894_p2 = scmp.ne.s32.totalorder %s1335_s6, %s893_s21  ;;  %p897_p3 = scmp.lt.u32.totalorder %s893_s21, %s1335_s6 }
  0x2d   :  { %p899_p4 = pnand %p897_p3, %p894_p2 }
  0x2f   :  { %902 = shalt.err (!%p899_p4)
}
  0x30   :  { %s903_s28 = scalar_lea.vmem %s94_s22, 512  ;;  %p908_p6 = scmp.lt.s32.totalorder %s94_s22, %s94_s22 }
  0x31   :  { %p904_p5 = scmp.ne.s32.totalorder %s94_s22, %s903_s28  ;;  %p909_p7 = scmp.lt.s32.totalorder %s903_s28, %s903_s28 }
  0x33   :  { %p910_p8 = por %p909_p7, %p908_p6 }
  0x35   :  { %p911_p9 = pnand %p910_p8, %p904_p5 }
  0x37   :  { %914 = shalt.err (!%p911_p9)
}
  0x38   :  { %99 = dma.hbm_to_vmem [thread:$0]  %s1335_s6, 512, %s94_s22, [#allocation13], %s1062_s24, %s1062_s24, %s1063_s13  }
  0x39   :  { %s1064_s29 = smov [#allocation3]   ;;  %s1065_s1 = smov [#allocation8]  }
  0x3a   :  { %s36_s30 = sshll.u32 %s1064_s29, 4  ;;  %s55_s0 = sshll.u32 %s1065_s1, 4  ;;  %s37_s30 = int_to_ptr.vmem [resolvable:$true] %s36_s30  ;;  %s56_s0 = int_to_ptr.vmem [resolvable:$true] %s55_s0 }
  0x3b   :  { %s1348_s19 = sld [smem:[#allocation24_spill]] }
  0x41   :  { %s915_s21 = scalar_lea.hbm %s1348_s19, 128 }
  0x42   :  { %p916_p10 = scmp.ne.s32.totalorder %s1348_s19, %s915_s21  ;;  %p919_p11 = scmp.lt.u32.totalorder %s915_s21, %s1348_s19 }
  0x44   :  { %p921_p12 = pnand %p919_p11, %p916_p10 }
  0x46   :  { %924 = shalt.err (!%p921_p12)
}
  0x47   :  { %s925_s6 = scalar_lea.vmem %s37_s30, 128  ;;  %p930_p0 = scmp.lt.s32.totalorder %s37_s30, %s37_s30 }
  0x48   :  { %p926_p13 = scmp.ne.s32.totalorder %s37_s30, %s925_s6  ;;  %p931_p1 = scmp.lt.s32.totalorder %s925_s6, %s925_s6 }
  0x4a   :  { %p932_p2 = por %p931_p1, %p930_p0 }
  0x4c   :  { %p933_p3 = pnand %p932_p2, %p926_p13 }
  0x4e   :  { %936 = shalt.err (!%p933_p3)
}
  0x4f   :  { %39 = dma.hbm_to_vmem [thread:$0]  %s1348_s19, 128, %s37_s30, [#allocation4]  }
  0x50   :  { %s937_s29 = scalar_lea.hbm %s1331_s2, 256 }
  0x51   :  { %p938_p4 = scmp.ne.s32.totalorder %s1331_s2, %s937_s29  ;;  %p941_p5 = scmp.lt.u32.totalorder %s937_s29, %s1331_s2 }
  0x53   :  { %p943_p6 = pnand %p941_p5, %p938_p4 }
  0x55   :  { %946 = shalt.err (!%p943_p6)
}
  0x56   :  { %s947_s23 = scalar_lea.vmem %s56_s0, 256  ;;  %p952_p8 = scmp.lt.s32.totalorder %s56_s0, %s56_s0 }
  0x57   :  { %p948_p7 = scmp.ne.s32.totalorder %s56_s0, %s947_s23  ;;  %p953_p9 = scmp.lt.s32.totalorder %s947_s23, %s947_s23 }
  0x59   :  { %p954_p10 = por %p953_p9, %p952_p8 }
  0x5b   :  { %p955_p11 = pnand %p954_p10, %p948_p7 }
  0x5d   :  { %958 = shalt.err (!%p955_p11)
}
  0x5e   :  { %61 = dma.hbm_to_vmem [thread:$0]  %s1331_s2, 256, %s56_s0, [#allocation7], %s1062_s24, %s1062_s24, %s1063_s13  }
  0x5f   :  { %s1066_s25 = smov [#allocation11]   ;;  %s1067_s27 = smov [#allocation14]  }
  0x60   :  { %s81_s26 = sshll.u32 %s1066_s25, 4  ;;  %s105_s6 = sshll.u32 %s1067_s27, 4  ;;  %s82_s26 = int_to_ptr.vmem [resolvable:$true] %s81_s26  ;;  %s106_s6 = int_to_ptr.vmem [resolvable:$true] %s105_s6 }
  0x61   :  { %s959_s3 = scalar_lea.hbm %s1334_s5, 512 }
  0x62   :  { %p960_p12 = scmp.ne.s32.totalorder %s1334_s5, %s959_s3  ;;  %p963_p13 = scmp.lt.u32.totalorder %s959_s3, %s1334_s5 }
  0x64   :  { %p965_p0 = pnand %p963_p13, %p960_p12 }
  0x66   :  { %968 = shalt.err (!%p965_p0)
}
  0x67   :  { %s969_s2 = scalar_lea.vmem %s82_s26, 512  ;;  %p974_p2 = scmp.lt.s32.totalorder %s82_s26, %s82_s26 }
  0x68   :  { %p970_p1 = scmp.ne.s32.totalorder %s82_s26, %s969_s2  ;;  %p975_p3 = scmp.lt.s32.totalorder %s969_s2, %s969_s2 }
  0x6a   :  { %p976_p4 = por %p975_p3, %p974_p2 }
  0x6c   :  { %p977_p5 = pnand %p976_p4, %p970_p1 }
  0x6e   :  { %980 = shalt.err (!%p977_p5)
}
  0x6f   :  { %87 = dma.hbm_to_vmem [thread:$0]  %s1334_s5, 512, %s82_s26, [#allocation10], %s1062_s24, %s1062_s24, %s1063_s13  }
  0x70   :  { %s981_s30 = scalar_lea.hbm %s1336_s7, 512 }
  0x71   :  { %p982_p6 = scmp.ne.s32.totalorder %s1336_s7, %s981_s30  ;;  %p985_p7 = scmp.lt.u32.totalorder %s981_s30, %s1336_s7 }
  0x73   :  { %p987_p8 = pnand %p985_p7, %p982_p6 }
  0x75   :  { %990 = shalt.err (!%p987_p8)
}
  0x76   :  { %s991_s28 = scalar_lea.vmem %s106_s6, 512  ;;  %p996_p10 = scmp.lt.s32.totalorder %s106_s6, %s106_s6 }
  0x77   :  { %p992_p9 = scmp.ne.s32.totalorder %s106_s6, %s991_s28  ;;  %p997_p11 = scmp.lt.s32.totalorder %s991_s28, %s991_s28 }
  0x79   :  { %p998_p12 = por %p997_p11, %p996_p10 }
  0x7b   :  { %p999_p13 = pnand %p998_p12, %p992_p9 }
  0x7d   :  { %1002 = shalt.err (!%p999_p13)
}
  0x7e   :  { %111 = dma.hbm_to_vmem [thread:$0]  %s1336_s7, 512, %s106_s6, [#allocation13], %s1062_s24, %s1062_s24, %s1063_s13  }
  0x7f   :  { %1047 = dma.done.wait [#allocation4], 128  }
  0x80   :  { %1048 = vsyncadd [#allocation4], 4294967168 }
  0x81   :  { %1049 = dma.done.wait [#allocation7], 384  }
  0x82   :  { %1050 = vsyncadd [#allocation7], 4294966912 }
  0x83   :  { %1051 = dma.done.wait [#allocation10], 768  }
  0x84   :  { %1052 = vsyncadd [#allocation10], 4294966528 }
  0x85   :  { %1053 = dma.done.wait [#allocation13], 1024  }
  0x86   :  { %1054 = vsyncadd [#allocation13], 4294966272  ;;  %v1068_v1 = vmov 0.0|0.0   ;;  %vm1069_vm0 = vmmov 0   ;;  %v1070_v2 = vmov 0.0   ;;  %v151_v3 = vld [vmem:[#allocation11] sm:$0xff] }
  0x87   :  { %796 = vmatprep.subr.bf16.mxu0 %v1068_v1  ;;  %802 = vmatprep.subr.bf16.mxu1 %v1068_v1  ;;  %v152_v4 = vld [vmem:[#allocation11 + $0x8] sm:$0xff]  ;;  %v149_v5 = vld [vmem:[#allocation8] sm:$0xff]  ;;  %v153_v8 = vld [vmem:[#allocation11 + $0x10] sm:$0xff]  ;;  %vm229_vm1 = vcmask 130048   ;;  %vm155_vm2 = vcmask 261120  }
  0x88   :  { %757 = vmatprep.mubr.msk.f32.mxu1 %vm1069_vm0, %v1070_v2  ;;  %750 = vmatprep.mubr.msk.f32.mxu0 %vm1069_vm0, %v1070_v2  ;;  %v797_v6 = vpack.c.bf16 %v152_v4, %v151_v3  ;;  %v150_v7 = vld [vmem:[#allocation8 + $0x8] sm:$0xff]  ;;  %v154_v9 = vld [vmem:[#allocation11 + $0x18] sm:$0xff]  ;;  %v319_v11 = vld [vmem:[#allocation12] sm:$0xff] }
  0x89   :  { %v803_v10 = vpack.c.bf16 %v150_v7, %v149_v5  ;;  %v800_v12 = vpack.c.bf16 %v154_v9, %v153_v8  ;;  %v320_v13 = vld [vmem:[#allocation12 + $0x8] sm:$0xff]  ;;  %v147_v14 = vld [vmem:[#allocation3] sm:$0xff]  ;;  %v318_v17 = vld [vmem:[#allocation9 + $0x8] sm:$0xff] }
  0x8a   :  { %798 = vmatpush3.bf16.msra.mxu0 %v797_v6  ;;  %v806_v15 = vpack.c.bf16 %v320_v13, %v319_v11  ;;  %v317_v16 = vld [vmem:[#allocation9] sm:$0xff]  ;;  %v322_v19 = vld [vmem:[#allocation12 + $0x18] sm:$0xff]  ;;  %v556_v25 = vld [vmem:[#allocation14] sm:$0xff] }
  0x8b   :  { %799 = vmatprep.subr.bf16.mxu0 %v1068_v1  ;;  %804 = vmatpush3.bf16.msra.mxu1 %v803_v10  ;;  %v321_v18 = vld [vmem:[#allocation12 + $0x10] sm:$0xff]  ;;  %v1264_v20 = vld [vmem:[#allocation6] sm:$0xff]  ;;  %v812_v21 = vpack.c.bf16 %v318_v17, %v317_v16  ;;  %v557_v26 = vld [vmem:[#allocation14 + $0x8] sm:$0xff]  ;;  %v1071_v10 = vmov 0  }
  0x8c   :  { %805 = vmatprep.subr.bf16.mxu1 %v1068_v1  ;;  %v809_v22 = vpack.c.bf16 %v322_v19, %v321_v18  ;;  %v477_v23 = vld [vmem:[%s1333_s4] sm:$0xff]  ;;  %v478_v24 = vld [vmem:[%s1333_s4 + $0x8] sm:$0xff]  ;;  %v818_v28 = vpack.c.bf16 %v557_v26, %v556_v25  ;;  %838 = vset.pattern.permute.xlu0 %v1071_v10 }
  0x8d   :  { %v815_v27 = vpack.c.bf16 %v478_v24, %v477_v23  ;;  %v558_v29 = vld [vmem:[#allocation14 + $0x10] sm:$0xff]  ;;  %v559_v30 = vld [vmem:[#allocation14 + $0x18] sm:$0xff]  ;;  %v706_v35 = vld [vmem:[%s1337_s8] ss:$0 sm:$0xff] }
  0x8e   :  { %801 = vmatpush3.bf16.msra.mxu0 %v800_v12  ;;  %758 = vmatmul.mubr.msk.f32.vlgmr.msra.gmra.mrb[0].mxu1 %vm229_vm1, %v147_v14  ;;  %v821_v31 = vpack.c.bf16 %v559_v30, %v558_v29  ;;  %v710_v42 = vld [vmem:[%s1338_s9] ss:$0 sm:$0xff] }
  0x8f   :  { %807 = vmatpush3.bf16.msra.mxu1 %v806_v15  ;;  %811 = vmatprep.subr.bf16.mxu0 %v1068_v1  ;;  %v714_v55 = vld [vmem:[%s1340_s11] ss:$0 sm:$0xff] }
  0x90   :  { %808 = vmatprep.subr.bf16.mxu1 %v1068_v1  ;;  %768 = vmatprep.mubr.msk.f32.mxu1 %vm1069_vm0, %v1070_v2  ;;  %v712_v57 = vld [vmem:[%s1339_s10] ss:$0 sm:$0xff]  ;;  %s1072_s10 = smov [#allocation16]  }
  0x91   :  { %751 = vmatmul.mubr.msk.f32.vlgmr.msra.gmra.mrb[0].mxu0 %vm155_vm2, %v1264_v20  ;;  %v716_v4 = vld [vmem:[%s1341_s12] ss:$0 sm:$0xff]  ;;  %s688_s21 = sshll.u32 %s1072_s10, 4  ;;  %s689_s21 = int_to_ptr.vmem [resolvable:$true] %s688_s21 }
  0x92   :  { %813 = vmatpush3.bf16.msra.mxu0 %v812_v21  ;;  %775 = vmatprep.mubr.msk.f32.mxu0 %vm1069_vm0, %v1070_v2  ;;  %v669_v5 = vld [vmem:[%s1343_s14] sm:$0xff]  ;;  %s1003_s12 = scalar_lea.vmem %s689_s21, 128  ;;  %p1008_p1 = scmp.lt.s32.totalorder %s689_s21, %s689_s21 }
  0x93   :  { %810 = vmatpush3.bf16.msra.mxu1 %v809_v22  ;;  %814 = vmatprep.subr.bf16.mxu0 %v1068_v1  ;;  %v717_v11 = vld [vmem:[#allocation2] ss:$0 sm:$0xff]  ;;  %p1004_p0 = scmp.ne.s32.totalorder %s689_s21, %s1003_s12  ;;  %p1009_p2 = scmp.lt.s32.totalorder %s1003_s12, %s1003_s12 }
  0x94   :  { %817 = vmatprep.subr.bf16.mxu1 %v1068_v1 }
  0x95   :  { %776 = vmatmul.mubr.msk.f32.vlgmr.msra.gmra.mrb[2].mxu0 %vm229_vm1, %v147_v14  ;;  %p1010_p3 = por %p1009_p2, %p1008_p1 }
  0x96   :  { %769 = vmatmul.mubr.msk.f32.vlgmr.msra.gmra.mrb[2].mxu1 %vm155_vm2, %v1264_v20  ;;  %816 = vmatpush3.bf16.msra.mxu0 %v815_v27 }
  0x97   :  { %819 = vmatpush3.bf16.msra.mxu1 %v818_v28  ;;  %793 = vmatprep.mubr.msk.f32.mxu1 %vm1069_vm0, %v1070_v2  ;;  %p1011_p4 = pnand %p1010_p3, %p1004_p0 }
  0x98   :  { %820 = vmatprep.subr.bf16.mxu1 %v1068_v1  ;;  %782 = vmatprep.mubr.msk.f32.mxu0 %vm1069_vm0, %v1070_v2 }
  0x99   :  { %783 = vmatmul.mubr.msk.f32.vlgmr.msra.gmra.mrb[4].mxu0 %vm229_vm1, %v147_v14 }
  0x9b   :  { %822 = vmatpush3.bf16.msra.mxu1 %v821_v31 }
  0x9e   :  { %794 = vmatmul.mubr.msk.f32.vlgmr.msra.gmra.mrb[4].mxu1 %vm155_vm2, %v1264_v20 }
 0x161   :  { %v299_v32 = vpop.f32.mrb[0].mxu1 }
 0x162   :  { %v759_v33 = vpop.f32.mrb[1].mxu1 }
 0x164   :  { %v225_v34 = vpop.f32.mrb[0].mxu0 }
 0x165   :  { %v300_v36 = vadd.f32 %v299_v32, %v225_v34  ;;  %v752_v37 = vpop.f32.mrb[1].mxu0 }
 0x167   :  { %v310_v38 = vadd.f32 %v706_v35, %v300_v36 }
 0x168   :  { %v459_v39 = vpop.f32.mrb[2].mxu0 }
 0x169   :  { %v707_v40 = vmul.f32 -1.442695, %v310_v38  ;;  %v389_v41 = vpop.f32.mrb[2].mxu1  ;;  %v777_v43 = vpop.f32.mrb[3].mxu0 }
 0x16a   :  { %v460_v44 = vadd.f32 %v459_v39, %v389_v41  ;;  %v770_v45 = vpop.f32.mrb[3].mxu1 }
 0x16b   :  { %839 = vpow2.f32 %v707_v40 }
 0x16c   :  { %v470_v46 = vadd.f32 %v710_v42, %v460_v44  ;;  %v552_v47 = vpop.f32.mrb[4].mxu0 }
 0x16d   :  { %v784_v48 = vpop.f32.mrb[5].mxu0  ;;  %v553_v59 = vadd.f32 %v712_v57, %v552_v47 }
 0x16e   :  { %v711_v49 = vmul.f32 -1.442695, %v470_v46 }
 0x170   :  { %841 = vpow2.f32 %v711_v49 }
 0x171   :  { %v633_v50 = vpop.f32.mrb[4].mxu1 }
 0x172   :  { %v795_v51 = vpop.f32.mrb[5].mxu1  ;;  %v634_v58 = vadd.f32 %v714_v55, %v633_v50 }
 0x175   :  { %v840_v52 = vpop.eup %839 }
 0x176   :  { %v314_v53 = vadd.f32 1.0, %v840_v52 }
 0x178   :  { %843 = vrcp.f32 %v314_v53 }
 0x17a   :  { %v842_v54 = vpop.eup %841 }
 0x17b   :  { %v474_v56 = vadd.f32 1.0, %v842_v54 }
 0x17d   :  { %845 = vrcp.f32 %v474_v56 }
 0x182   :  { %v844_v60 = vpop.eup %843 }
 0x183   :  { %v637_v61 = vmul.f32 %v844_v60, %v634_v58 }
 0x185   :  { %v638_v62 = vadd.f32 %v637_v61, %v553_v59 }
 0x187   :  { %847 = vtanh.f32 %v638_v62  ;;  %v846_v63 = vpop.eup %845 }
 0x188   :  { %v640_v0 = vsub.f32 1.0, %v846_v63  ;;  %v642_v3 = vmul.f32 %v846_v63, %v1264_v20 }
 0x191   :  { %v848_v1 = vpop.eup %847 }
 0x192   :  { %v641_v2 = vmul.f32 %v848_v1, %v640_v0 }
 0x194   :  { %v643_v6 = vadd.f32 %v642_v3, %v641_v2 }
 0x196   :  { %v651_v7 = vmul.f32 %v716_v4, %v643_v6  ;;  %v670_v8 = vmul.f32 %v669_v5, %v643_v6 }
 0x198   :  { %v652_v9 = vsel %vm155_vm2, %v651_v7, 0.0  ;;  %671 = vst.msk [vmem:[#allocation16] sm:$0xff] %vm155_vm2, %v670_v8 }
 0x199   :  { %653 = vadd.xlane.f32.xlu0 %v652_v9 }
 0x226   :  { %v654_v12 = vpop.xlane.xlu0 %653 }
 0x227   :  { %v662_v13 = vadd.f32 %v717_v11, %v654_v12 }
 0x229   :  { %665 = vperm.xlu0 %838, %v662_v13  }
 0x22a   :  { %1014 = shalt.err (!%p1011_p4)
}
 0x22b   :  { %s1015_s30 = scalar_lea.hbm %s1345_s16, 128 }
 0x22c   :  { %p1016_p5 = scmp.ne.s32.totalorder %s1345_s16, %s1015_s30  ;;  %p1019_p6 = scmp.lt.u32.totalorder %s1015_s30, %s1345_s16 }
 0x22e   :  { %p1021_p7 = pnand %p1019_p6, %p1016_p5 }
 0x230   :  { %1024 = shalt.err (!%p1021_p7)
}
 0x231   :  { %691 = dma.vmem_to_hbm [thread:$0]  %s689_s21, 128, %s1345_s16, [#allocation17]  }
 0x232   :  { %s1073_s26 = smov [#allocation15]  }
 0x233   :  { %s678_s7 = sshll.u32 %s1073_s26, 4  ;;  %s679_s7 = int_to_ptr.vmem [resolvable:$true] %s678_s7 }
 0x234   :  { %s1025_s24 = scalar_lea.vmem %s679_s7, 128  ;;  %p1030_p9 = scmp.lt.s32.totalorder %s679_s7, %s679_s7 }
 0x235   :  { %p1026_p8 = scmp.ne.s32.totalorder %s679_s7, %s1025_s24  ;;  %p1031_p10 = scmp.lt.s32.totalorder %s1025_s24, %s1025_s24 }
 0x237   :  { %p1032_p11 = por %p1031_p10, %p1030_p9 }
 0x239   :  { %p1033_p12 = pnand %p1032_p11, %p1026_p8 }
 0x2a8   :  { %v666_v14 = vpop.permute.xlu0 %665 }
 0x2a9   :  { %668 = vst [vmem:[#allocation15] sm:$0xff] %v666_v14 }
 0x2aa   :  { %1036 = shalt.err (!%p1033_p12)
}
 0x2ab   :  { %s1037_s4 = scalar_lea.hbm %s1344_s15, 128 }
 0x2ac   :  { %p1038_p13 = scmp.ne.s32.totalorder %s1344_s15, %s1037_s4  ;;  %p1041_p0 = scmp.lt.u32.totalorder %s1037_s4, %s1344_s15 }
 0x2ae   :  { %p1043_p1 = pnand %p1041_p0, %p1038_p13 }
 0x2b0   :  { %1046 = shalt.err (!%p1043_p1)
}
 0x2b1   :  { %681 = dma.vmem_to_hbm [thread:$0]  %s679_s7, 128, %s1344_s15, [#allocation5]  }
 0x2b2   :  { %1055 = dma.done.wait [#allocation5], 128  }
 0x2b3   :  { %1056 = vsyncadd [#allocation5], 4294967168 }
 0x2b4   :  { %1057 = dma.done.wait [#allocation17], 128  }
 0x2b5   :  { %1058 = vsyncadd [#allocation17], 4294967168 }
 0x2b6   :  { %698 = vsyncpa [#allocation4], 1 }
 0x2b7   :  { %699 = vsyncpa [#allocation7], 1 }
 0x2b8   :  { %700 = vsyncpa [#allocation10], 1 }
 0x2b9   :  { %701 = vsyncpa [#allocation13], 1 }
 0x2ba   :  { %702 = vsyncpa [#allocation5], 1 }
 0x2bb   :  { %703 = vsyncpa [#allocation17], 1 }

</bundles_post_ra>
